<compile_context>
chip_gen: v5e
topology: v5e:2x2
jax: 0.10.0
libtpu: 0.0.40
codegen_flags: <defaults>
</compile_context>

<pallas_src>
import math

import jax
import jax.numpy as jnp
from jax.experimental import pallas as pl
from jax.experimental.pallas import tpu as pltpu


def critic_kernel(x_ref, w1_ref, b1_ref, w2_ref, b2_ref, w3_ref, b3_ref, o_ref):
    x = x_ref[...]                                              # (d, TB), batch on lanes

    # linear1 + relu: (H, d) @ (d, TB) -> (H, TB)
    h1 = jnp.dot(w1_ref[...], x, preferred_element_type=jnp.float32) + b1_ref[...]
    h1 = jnp.maximum(h1, 0.0)

    # dropout (eval mode) -> identity

    # linear2 + relu: (H, H) @ (H, TB) -> (H, TB)
    h2 = jnp.dot(w2_ref[...], h1, preferred_element_type=jnp.float32) + b2_ref[...]
    h2 = jnp.maximum(h2, 0.0)

    # dropout (eval mode) -> identity

    # linear3 (out_features == 1): VPU multiply + sublane (XLU) reduction instead
    # of an M=1 MXU matmul; bias is a scalar read from SMEM. Result is a
    # lane-dense (1, TB) row -> full unmasked stores.
    out = jnp.sum(h2 * w3_ref[...], axis=0, keepdims=True) + b3_ref[0]
    o_ref[...] = out.astype(o_ref.dtype)


def _round_up(x, m):
    return ((x + m - 1) // m) * m


def critic_forward(state, action, params, *, block_b=16384, min_split=1024):
    """Pallas-backed Critic.forward(state, action).

    state : (B, input_dim) f32, action : (B, action_dim) f32 -> (B, 1) f32.
    """
    w1, b1, w2, b2, w3c, b3 = params
    B, d_s = state.shape
    d = d_s + action.shape[1]

    # One tiny XLA copy: concat state/action and put the batch on the lane axis.
    xt = jnp.concatenate([state, action], axis=1).T             # (d, B)

    # Batch-tile selection (batch == lane axis):
    #   * small B: one full-extent block (block dim == array dim is legal).
    #   * larger B: lane-aligned (multiple-of-128) tiles of <= block_b, and at
    #     least 2 tiles so both v7x TensorCores get work. The ragged tail is
    #     handled by Pallas boundary-block padding, so no host-side jnp.pad.
    if B <= min_split:
        tb = B
    else:
        tb = min(block_b, _round_up(pl.cdiv(B, 2), 128))
    grid = (pl.cdiv(B, tb),)

    const = lambda shape: pl.BlockSpec(shape, lambda i: (0, 0))

    out = pl.pallas_call(
        critic_kernel,
        out_shape=jax.ShapeDtypeStruct((1, B), jnp.float32),
        grid=grid,
        in_specs=[
            pl.BlockSpec((d, tb), lambda i: (0, i)),            # x^T batch tile
            const(w1.shape),                                    # (H, d)
            const(b1.shape),                                    # (H, 1)
            const(w2.shape),                                    # (H, H)
            const(b2.shape),                                    # (H, 1)
            const(w3c.shape),                                   # (H, 1)
            pl.BlockSpec(memory_space=pltpu.MemorySpace.SMEM),  # b3 scalar
        ],
        out_specs=pl.BlockSpec((1, tb), lambda i: (0, i)),      # lane-dense row
        compiler_params=pltpu.CompilerParams(
            dimension_semantics=("parallel",),                  # megacore on v7x
            vmem_limit_bytes=48 * 1024 * 1024),
    )(xt, w1, b1, w2, b2, w3c, b3)

    # (1, B) row-major == (B, 1) row-major: free reshape back to column form.
    return out.reshape(B, 1)


def init_critic_params(key, input_dim, action_dim, hidden_size, init_w=3e-05):
    """Init matching nn.Linear defaults (+ custom linear3 init).

    Weights are kept in PyTorch's native (out_features, in_features) layout,
    which is exactly what the lane-major kernel consumes (W @ x^T). Biases are
    (H, 1) columns; linear3 weight is stored as an (H, 1) column and its bias
    as a (1,) scalar for the SMEM path.
    """
    d_in = input_dim + action_dim
    k1, k2, k3, k4, k5, k6 = jax.random.split(key, 6)

    def u(k, shape, bound):
        return jax.random.uniform(k, shape, jnp.float32, minval=-bound, maxval=bound)

    bound1 = 1.0 / math.sqrt(d_in)
    bound2 = 1.0 / math.sqrt(hidden_size)

    w1 = u(k1, (hidden_size, d_in), bound1)         # linear1.weight
    b1 = u(k2, (hidden_size, 1), bound1)            # linear1.bias (column)
    w2 = u(k3, (hidden_size, hidden_size), bound2)  # linear2.weight
    b2 = u(k4, (hidden_size, 1), bound2)            # linear2.bias (column)
    w3c = u(k5, (hidden_size, 1), init_w)           # linear3.weight^T (column)
    b3 = u(k6, (1,), init_w)                        # linear3.bias (scalar)
    return (w1, b1, w2, b2, w3c, b3)


def critic_reference(state, action, params):
    """Pure-JAX reference for validation (eval-mode dropout == identity)."""
    w1, b1, w2, b2, w3c, b3 = params
    x = jnp.concatenate([state, action], axis=1)
    h = jnp.maximum(x @ w1.T + b1.T, 0.0)
    h = jnp.maximum(h @ w2.T + b2.T, 0.0)
    return h @ w3c + b3


if __name__ == "__main__":
    input_dim, action_dim, hidden_size = 4, 4, 32

    key = jax.random.PRNGKey(0)
    kp, k1, k2, k3, k4, k5, k6 = jax.random.split(key, 7)
    params = init_critic_params(kp, input_dim, action_dim, hidden_size)

    # Small case (single full-extent block, grid=(1,)).
    B = 2
    state = jax.random.normal(k1, (B, input_dim), jnp.float32)
    action = jax.random.normal(k2, (B, action_dim), jnp.float32)
    out = jax.block_until_ready(critic_forward(state, action, params))
    ref = critic_reference(state, action, params)
    assert out.shape == (B, 1), out.shape
    assert jnp.allclose(out, ref, atol=1e-5, rtol=1e-5)

    # Mid-size ragged batch: still a single lane-dense block.
    B2 = 520
    state2 = jax.random.normal(k3, (B2, input_dim), jnp.float32)
    action2 = jax.random.normal(k4, (B2, action_dim), jnp.float32)
    out2 = jax.block_until_ready(critic_forward(state2, action2, params))
    ref2 = critic_reference(state2, action2, params)
    assert out2.shape == (B2, 1), out2.shape
    assert jnp.allclose(out2, ref2, atol=1e-5, rtol=1e-5)

    # Larger ragged batch: exercises the multi-tile pipeline, the >=2-tile
    # megacore split, and the partially out-of-bounds boundary block.
    B3 = 3000
    state3 = jax.random.normal(k5, (B3, input_dim), jnp.float32)
    action3 = jax.random.normal(k6, (B3, action_dim), jnp.float32)
    out3 = jax.block_until_ready(critic_forward(state3, action3, params))
    ref3 = critic_reference(state3, action3, params)
    assert out3.shape == (B3, 1), out3.shape
    assert jnp.allclose(out3, ref3, atol=1e-5, rtol=1e-5)

    print("KERNEL_OK")
</pallas_src>

<mosaic_0001>
module attributes {stable_mosaic.version = 11 : i64} {
  func.func @critic_kernel(%arg0: i32, %arg1: memref<8x2xf32, #tpu.memory_space<vmem>>, %arg2: memref<32x8xf32, #tpu.memory_space<vmem>>, %arg3: memref<32x1xf32, #tpu.memory_space<vmem>>, %arg4: memref<32x32xf32, #tpu.memory_space<vmem>>, %arg5: memref<32x1xf32, #tpu.memory_space<vmem>>, %arg6: memref<32x1xf32, #tpu.memory_space<vmem>>, %arg7: memref<1xf32, #tpu.memory_space<smem>>, %arg8: memref<1x2xf32, #tpu.memory_space<vmem>>) attributes {dimension_semantics = [#tpu.dimension_semantics<parallel>], iteration_bounds = array<i64: 1>, scalar_prefetch = 0 : i64, scratch_operands = 0 : i64, tpu.core_type = #tpu.core_type<tc>, window_params = [{transform_indices = @transform_0, window_bounds = array<i64: 8, 2>}, {pipeline_mode = #tpu.pipeline_mode<synchronous>, transform_indices = @transform_1, window_bounds = array<i64: 32, 8>}, {pipeline_mode = #tpu.pipeline_mode<synchronous>, transform_indices = @transform_2, window_bounds = array<i64: 32, 1>}, {pipeline_mode = #tpu.pipeline_mode<synchronous>, transform_indices = @transform_3, window_bounds = array<i64: 32, 32>}, {pipeline_mode = #tpu.pipeline_mode<synchronous>, transform_indices = @transform_4, window_bounds = array<i64: 32, 1>}, {pipeline_mode = #tpu.pipeline_mode<synchronous>, transform_indices = @transform_5, window_bounds = array<i64: 32, 1>}, {transform_indices = @transform_6, window_bounds = array<i64: 1>}, {transform_indices = @transform_7, window_bounds = array<i64: 1, 2>}]} {
    %c0 = arith.constant 0 : index
    %c0_0 = arith.constant 0 : index
    %0 = vector.load %arg1[%c0, %c0_0] : memref<8x2xf32, #tpu.memory_space<vmem>>, vector<8x2xf32>
    %c0_1 = arith.constant 0 : index
    %c0_2 = arith.constant 0 : index
    %1 = vector.load %arg2[%c0_1, %c0_2] : memref<32x8xf32, #tpu.memory_space<vmem>>, vector<32x8xf32>
    %cst = arith.constant dense<0.000000e+00> : vector<32x2xf32>
    %2 = tpu.matmul %1, %0, %cst {dimension_numbers = #tpu.dot_dimension_numbers<[1], [0], [0], [1], [0, 0, 1, 1], [], []>} : vector<32x8xf32>, vector<8x2xf32>, vector<32x2xf32> -> vector<32x2xf32>
    %c0_3 = arith.constant 0 : index
    %c0_4 = arith.constant 0 : index
    %3 = vector.load %arg3[%c0_3, %c0_4] : memref<32x1xf32, #tpu.memory_space<vmem>>, vector<32x1xf32>
    %4 = vector.broadcast %3 : vector<32x1xf32> to vector<32x2xf32>
    %5 = arith.addf %2, %4 : vector<32x2xf32>
    %cst_5 = arith.constant 0.000000e+00 : f32
    %6 = vector.broadcast %cst_5 : f32 to vector<32x2xf32>
    %7 = arith.maximumf %5, %6 : vector<32x2xf32>
    %c0_6 = arith.constant 0 : index
    %c0_7 = arith.constant 0 : index
    %8 = vector.load %arg4[%c0_6, %c0_7] : memref<32x32xf32, #tpu.memory_space<vmem>>, vector<32x32xf32>
    %cst_8 = arith.constant dense<0.000000e+00> : vector<32x2xf32>
    %9 = tpu.matmul %8, %7, %cst_8 {dimension_numbers = #tpu.dot_dimension_numbers<[1], [0], [0], [1], [0, 0, 1, 1], [], []>} : vector<32x32xf32>, vector<32x2xf32>, vector<32x2xf32> -> vector<32x2xf32>
    %c0_9 = arith.constant 0 : index
    %c0_10 = arith.constant 0 : index
    %10 = vector.load %arg5[%c0_9, %c0_10] : memref<32x1xf32, #tpu.memory_space<vmem>>, vector<32x1xf32>
    %11 = vector.broadcast %10 : vector<32x1xf32> to vector<32x2xf32>
    %12 = arith.addf %9, %11 : vector<32x2xf32>
    %cst_11 = arith.constant 0.000000e+00 : f32
    %13 = vector.broadcast %cst_11 : f32 to vector<32x2xf32>
    %14 = arith.maximumf %12, %13 : vector<32x2xf32>
    %c0_12 = arith.constant 0 : index
    %c0_13 = arith.constant 0 : index
    %15 = vector.load %arg6[%c0_12, %c0_13] : memref<32x1xf32, #tpu.memory_space<vmem>>, vector<32x1xf32>
    %16 = vector.broadcast %15 : vector<32x1xf32> to vector<32x2xf32>
    %17 = arith.mulf %14, %16 : vector<32x2xf32>
    %cst_14 = arith.constant dense<0.000000e+00> : vector<2xf32>
    %18 = vector.multi_reduction <add>, %17, %cst_14 [0] : vector<32x2xf32> to vector<2xf32>
    %19 = vector.shape_cast %18 : vector<2xf32> to vector<1x2xf32>
    %c0_15 = arith.constant 0 : index
    %20 = memref.load %arg7[%c0_15] : memref<1xf32, #tpu.memory_space<smem>>
    %21 = vector.broadcast %20 : f32 to vector<1x2xf32>
    %22 = arith.addf %19, %21 : vector<1x2xf32>
    %c0_16 = arith.constant 0 : index
    %c0_17 = arith.constant 0 : index
    %23 = vector.load %arg8[%c0_16, %c0_17] : memref<1x2xf32, #tpu.memory_space<vmem>>, vector<1x2xf32>
    tpu.vector_store %arg8[%c0_16, %c0_17], %22 {strides = array<i32>} : memref<1x2xf32, #tpu.memory_space<vmem>>, vector<1x2xf32>,
    return
  }
  func.func @transform_0(%arg0: i32) -> (i32, i32) {
    %c0_i32 = arith.constant 0 : i32
    %c0_i32_0 = arith.constant 0 : i32
    return %c0_i32, %arg0 : i32, i32
  }
  func.func @transform_1(%arg0: i32) -> (i32, i32) {
    %c0_i32 = arith.constant 0 : i32
    %c0_i32_0 = arith.constant 0 : i32
    %c0_i32_1 = arith.constant 0 : i32
    return %c0_i32, %c0_i32_0 : i32, i32
  }
  func.func @transform_2(%arg0: i32) -> (i32, i32) {
    %c0_i32 = arith.constant 0 : i32
    %c0_i32_0 = arith.constant 0 : i32
    %c0_i32_1 = arith.constant 0 : i32
    return %c0_i32, %c0_i32_0 : i32, i32
  }
  func.func @transform_3(%arg0: i32) -> (i32, i32) {
    %c0_i32 = arith.constant 0 : i32
    %c0_i32_0 = arith.constant 0 : i32
    %c0_i32_1 = arith.constant 0 : i32
    return %c0_i32, %c0_i32_0 : i32, i32
  }
  func.func @transform_4(%arg0: i32) -> (i32, i32) {
    %c0_i32 = arith.constant 0 : i32
    %c0_i32_0 = arith.constant 0 : i32
    %c0_i32_1 = arith.constant 0 : i32
    return %c0_i32, %c0_i32_0 : i32, i32
  }
  func.func @transform_5(%arg0: i32) -> (i32, i32) {
    %c0_i32 = arith.constant 0 : i32
    %c0_i32_0 = arith.constant 0 : i32
    %c0_i32_1 = arith.constant 0 : i32
    return %c0_i32, %c0_i32_0 : i32, i32
  }
  func.func @transform_6(%arg0: i32) -> i32 {
    %c0_i32 = arith.constant 0 : i32
    %c0_i32_0 = arith.constant 0 : i32
    return %c0_i32 : i32
  }
  func.func @transform_7(%arg0: i32) -> (i32, i32) {
    %c0_i32 = arith.constant 0 : i32
    %c0_i32_0 = arith.constant 0 : i32
    return %c0_i32, %arg0 : i32, i32
  }
}

</mosaic_0001>

<bundles_post_ra>
// kernel: tpu_custom_call.1
= control target key start
LH: loop header
LB: loop body
LE: loop exit
PB: predicated region body
PF: predicated region fallthrough
CT: control target
= control target key end

     0   :  { %vm57_vm0 = vcmask 64512   ;;  %v284_v3 = vmov 0   ;;  %s399_s0 = inlined_call_operand.vmem [shape: f32[8,2], index: 0, kind: input, shape index: {}]   ;;  %s400_s1 = inlined_call_operand.vmem [shape: f32[32,8], index: 1, kind: input, shape index: {}]   ;;  %s401_s2 = inlined_call_operand.vmem [shape: f32[32,1], index: 2, kind: input, shape index: {}]   ;;  %s402_s3 = inlined_call_operand.vmem [shape: f32[32,32], index: 3, kind: input, shape index: {}]   ;;  %s403_s4 = inlined_call_operand.vmem [shape: f32[32,1], index: 4, kind: input, shape index: {}]   ;;  %s404_s5 = inlined_call_operand.vmem [shape: f32[32,1], index: 5, kind: input, shape index: {}]   ;;  %s405_s6 = inlined_call_operand.<no memory space> [shape: f32[1], index: 6, kind: input, shape index: {}]   ;;  %s406_s7 = inlined_call_operand.hbm [shape: f32[1,2], index: 7, kind: output, shape index: {}]  }
   0x1   :  { %v28_v0 = vld [vmem:[%s399_s0] sm:$0xff]  ;;  %v30_v1 = vld [vmem:[%s400_s1 + $0x8] sm:$0xff]  ;;  %v36_v2 = vld [vmem:[%s401_s2 + $0x18] sm:$0xff]  ;;  %255 = vset.pattern.permute.xlu0 %v284_v3  ;;  %256 = vset.pattern.permute.xlu1 %v284_v3 }
   0x2   :  { %248 = vmatpush.msra.mxu3 %v28_v0  ;;  %v34_v4 = vld [vmem:[%s401_s2 + $0x8] sm:$0xff]  ;;  %54 = vperm.xlu0 %255, %v36_v2   ;;  %v29_v5 = vld [vmem:[%s400_s1] sm:$0xff] }
   0x3   :  { %241 = vmatmul.msk.f32.vlgmr.msra.gmra.mxu3 %vm57_vm0, %v30_v1  ;;  %85 = vmatpush.msra.mxu0 %v28_v0 }
   0x4   :  { %44 = vperm.xlu1 %256, %v34_v4   ;;  %240 = vmatmul.msk.f32.vlgmr.msra.gmra.mxu0 %vm57_vm0, %v29_v5 }
   0x5   :  { %13 = vsyncpa [#allocation4], 0  ;;  %257 = vset.pattern.permute.xlu2 %v284_v3  ;;  %v31_v6 = vld [vmem:[%s400_s1 + $0x10] sm:$0xff]  ;;  %v33_v8 = vld [vmem:[%s401_s2] sm:$0xff]  ;;  %vm131_vm1 = vcmask 261120   ;;  %vm205_vm2 = vcmask 15360  }
   0x6   :  { %v35_v7 = vld [vmem:[%s401_s2 + $0x10] sm:$0xff]  ;;  %v32_v9 = vld [vmem:[%s400_s1 + $0x18] sm:$0xff]  ;;  %v178_v12 = vld [vmem:[%s404_s5 + $0x8] sm:$0xff]  ;;  %s285_s15 = smov [#allocation3]   ;;  %s231_s19 = sshll.u32 %s406_s7, 4  ;;  %vm222_vm3 = vcmask 8192   ;;  %s232_s19 = int_to_ptr.hbm [resolvable:$true] %s231_s19 }
   0x7   :  { %v109_v10 = vld [vmem:[%s403_s4 + $0x10] sm:$0xff]  ;;  %v110_v11 = vld [vmem:[%s403_s4 + $0x18] sm:$0xff]  ;;  %v107_v14 = vld [vmem:[%s403_s4] sm:$0xff]  ;;  %s229_s16 = sshll.u32 %s285_s15, 4  ;;  %s230_s16 = int_to_ptr.vmem [resolvable:$true] %s229_s16 }
   0x8   :  { %v179_v13 = vld [vmem:[%s404_s5 + $0x10] sm:$0xff]  ;;  %113 = vperm.xlu2 %257, %v107_v14   ;;  %v108_v16 = vld [vmem:[%s403_s4 + $0x8] sm:$0xff]  ;;  %v177_v20 = vld [vmem:[%s404_s5] sm:$0xff] }
   0x9   :  { %v180_v28 = vld [vmem:[%s404_s5 + $0x18] sm:$0xff]  ;;  %v103_v34 = vld [vmem:[%s402_s3] sm:$0xff]  ;;  %v105_v35 = vld [vmem:[%s402_s3 + $0x10] sm:$0xff] }
   0xa   :  { %49 = vperm.xlu0 %255, %v35_v7   ;;  %v104_v36 = vld [vmem:[%s402_s3 + $0x8] sm:$0xff]  ;;  %v106_v37 = vld [vmem:[%s402_s3 + $0x18] sm:$0xff] }
   0xb   :  { %242 = vmatmul.msk.f32.gmra.mxu3 %vm57_vm0, %v31_v6 }
   0xc   :  { %39 = vperm.xlu1 %256, %v33_v8  }
  0x10   :  { %118 = vperm.xlu2 %257, %v108_v16  }
  0x12   :  { %123 = vperm.xlu0 %255, %v109_v10   ;;  %v220_v10 = vstv %s405_s6 }
  0x13   :  { %243 = vmatmul.msk.f32.gmra.mxu3 %vm57_vm0, %v32_v9 }
  0x14   :  { %128 = vperm.xlu1 %256, %v110_v11  }
  0x18   :  { %183 = vperm.xlu2 %257, %v177_v20  }
  0x1a   :  { %188 = vperm.xlu0 %255, %v178_v12  }
  0x1c   :  { %193 = vperm.xlu1 %256, %v179_v13  }
  0x20   :  { %198 = vperm.xlu2 %257, %v180_v28  }
  0x62   :  { %v114_v38 = vpop.permute.xlu2 %113 }
  0x6a   :  { %v119_v39 = vpop.permute.xlu2 %118 }
  0x72   :  { %v184_v47 = vpop.permute.xlu2 %183 }
  0x74   :  { %v55_v17 = vpop.permute.xlu0 %54 }
  0x76   :  { %v45_v19 = vpop.permute.xlu1 %44 }
  0x7a   :  { %v199_v63 = vpop.permute.xlu2 %198 }
  0x7c   :  { %v50_v21 = vpop.permute.xlu0 %49 }
  0x7e   :  { %v40_v29 = vpop.permute.xlu1 %39 }
  0x81   :  { %v87_v25 = vpop.f32.mrf.mxu0 }
  0x82   :  { %v88_v31 = vadd.f32 %v87_v25, %v40_v29 }
  0x84   :  { %v99_v33 = vmax.f32 %v88_v31, 0.0  ;;  %v124_v41 = vpop.permute.xlu0 %123 }
  0x86   :  { %v90_v15 = vpop.f32.mrf.mxu3  ;;  %v129_v43 = vpop.permute.xlu1 %128 }
  0x87   :  { %v91_v26 = vadd.f32 %v90_v15, %v45_v19 }
  0x89   :  { %v100_v32 = vmax.f32 %v91_v26, 0.0 }
  0x8c   :  { %v189_v53 = vpop.permute.xlu0 %188 }
  0x8e   :  { %v93_v18 = vpop.f32.mrf.mxu3  ;;  %v194_v55 = vpop.permute.xlu1 %193 }
  0x8f   :  { %v94_v23 = vadd.f32 %v93_v18, %v50_v21 }
  0x91   :  { %v101_v30 = vmax.f32 %v94_v23, 0.0 }
  0x96   :  { %v96_v22 = vpop.f32.mrf.mxu3 }
  0x97   :  { %v97_v24 = vadd.f32 %v96_v22, %v55_v17 }
  0x99   :  { %v102_v27 = vmax.f32 %v97_v24, 0.0 }
  0x9b   :  { %156 = vmatpush.msra.mxu1 %v102_v27  ;;  %249 = vmatpush.msra.mxu2 %v102_v27 }
  0x9d   :  { %157 = vmatpush.msra.mxu1 %v101_v30  ;;  %250 = vmatpush.msra.mxu2 %v101_v30 }
  0x9f   :  { %158 = vmatpush.msra.mxu1 %v100_v32  ;;  %251 = vmatpush.msra.mxu2 %v100_v32 }
  0xa1   :  { %159 = vmatpush.msra.mxu1 %v99_v33  ;;  %252 = vmatpush.msra.mxu2 %v99_v33 }
  0xa2   :  { %244 = vmatmul.msk.f32.vlgmr.msra.gmra.mxu1 %vm131_vm1, %v103_v34  ;;  %246 = vmatmul.msk.f32.vlgmr.msra.gmra.mxu2 %vm131_vm1, %v105_v35 }
  0xaa   :  { %245 = vmatmul.msk.f32.gmra.mxu1 %vm131_vm1, %v104_v36  ;;  %247 = vmatmul.msk.f32.gmra.mxu2 %vm131_vm1, %v106_v37 }
 0x11f   :  { %v161_v40 = vpop.f32.mrf.mxu1 }
 0x120   :  { %v162_v42 = vadd.f32 %v161_v40, %v114_v38 }
 0x122   :  { %v173_v45 = vmax.f32 %v162_v42, 0.0 }
 0x124   :  { %v201_v50 = vmul.f32 %v184_v47, %v173_v45 }
 0x125   :  { %v167_v44 = vpop.f32.mrf.mxu2 }
 0x126   :  { %v168_v46 = vadd.f32 %v167_v44, %v124_v41  ;;  %v206_v57 = vsel %vm205_vm2, %v201_v50, 0.0 }
 0x127   :  { %v164_v48 = vpop.f32.mrf.mxu1 }
 0x128   :  { %v165_v49 = vadd.f32 %v164_v48, %v119_v39  ;;  %v175_v51 = vmax.f32 %v168_v46, 0.0 }
 0x12a   :  { %v174_v52 = vmax.f32 %v165_v49, 0.0  ;;  %v203_v58 = vmul.f32 %v194_v55, %v175_v51 }
 0x12c   :  { %v202_v54 = vmul.f32 %v189_v53, %v174_v52  ;;  %v209_v0 = vsel %vm205_vm2, %v203_v58, 0.0 }
 0x12d   :  { %v170_v56 = vpop.f32.mrf.mxu2 }
 0x12e   :  { %v207_v59 = vsel %vm205_vm2, %v202_v54, 0.0  ;;  %v171_v60 = vadd.f32 %v170_v56, %v129_v43 }
 0x12f   :  { %v208_v61 = vadd.f32 %v207_v59, %v206_v57 }
 0x130   :  { %v176_v62 = vmax.f32 %v171_v60, 0.0 }
 0x131   :  { %v210_v2 = vadd.f32 %v209_v0, %v208_v61 }
 0x132   :  { %v204_v1 = vmul.f32 %v199_v63, %v176_v62 }
 0x134   :  { %v211_v3 = vsel %vm205_vm2, %v204_v1, 0.0 }
 0x135   :  { %v212_v4 = vadd.f32 %v211_v3, %v210_v2 }
 0x137   :  { %v213_v5 = vrot.slane %v212_v4, 4 }
 0x139   :  { %v214_v6 = vadd.f32 %v213_v5, %v212_v4 }
 0x13b   :  { %v215_v7 = vrot.slane %v214_v6, 2 }
 0x13d   :  { %v216_v8 = vadd.f32 %v215_v7, %v214_v6 }
 0x13f   :  { %v217_v9 = vrot.slane %v216_v8, 1 }
 0x141   :  { %v218_v11 = vadd.f32 %v217_v9, %v216_v8 }
 0x143   :  { %v221_v12 = vadd.f32 %v220_v10, %v218_v11 }
 0x145   :  { %223 = vst.msk [vmem:[#allocation3] sm:$0x1] %vm222_vm3, %v221_v12 }
 0x146   :  { %234 = dma.vmem_to_hbm [thread:$0]  %s230_s16, 16, %s232_s19, [#allocation4]  }
 0x147   :  { %282 = dma.done.wait [#allocation4], 16  }
 0x148   :  { %283 = vsyncadd [#allocation4], 4294967280 }
 0x149   :  { %239 = vsyncpa [#allocation4], 1 }

</bundles_post_ra>
